<compile_context>
chip_gen: v7x
topology: tpu7x:2x2x1
jax: 0.10.0
libtpu: 0.0.40
codegen_flags: <defaults>
</compile_context>

<pallas_src>
import jax
import jax.numpy as jnp
from jax.experimental import pallas as pl
from jax.experimental.pallas import tpu as pltpu

LOG_STD_MAX = 2.0
LOG_STD_MIN = -5.0


def _round_up(v, m):
    return ((v + m - 1) // m) * m


def actor_kernel(x_ref, w1_ref, b1_ref, w2_ref, b2_ref, wh_ref, bh_ref, out_ref):
    mm = w1_ref.dtype  # matmul (MXU input) dtype; accumulation is always f32

    # fc1 + ReLU
    h = jnp.dot(x_ref[...].astype(mm), w1_ref[...], preferred_element_type=jnp.float32)
    h = jnp.maximum(h + b1_ref[...], 0.0)
    # fc2 + ReLU
    h = jnp.dot(h.astype(mm), w2_ref[...], preferred_element_type=jnp.float32)
    h = jnp.maximum(h + b2_ref[...], 0.0)
    # fused heads: columns [0, Apad) = mean, [Apad, 2*Apad) = log_std (pre-squash)
    head = jnp.dot(h.astype(mm), wh_ref[...], preferred_element_type=jnp.float32)
    head = head + bh_ref[...]

    apad = head.shape[-1] // 2  # static, multiple of 128 -> lane-aligned slices/stores
    out_ref[:, :apad] = head[:, :apad].astype(out_ref.dtype)
    ls = jnp.tanh(head[:, apad:])
    out_ref[:, apad:] = (
        LOG_STD_MIN + 0.5 * (LOG_STD_MAX - LOG_STD_MIN) * (ls + 1.0)
    ).astype(out_ref.dtype)


def prepare_params(raw, *, matmul_dtype=jnp.bfloat16):
    """One-time packing of raw Linear params into the kernel layout.

    raw: dict with w1(D,H), b1(1,H), w2(H,H), b2(1,H), wm(H,A), bm(1,A),
    ws(H,A), bs(1,A), all f32. Returns a dict consumed by actor_forward.
    Do this once at setup (not per forward call).
    """
    H = raw["w1"].shape[1]
    A = raw["wm"].shape[1]
    Apad = _round_up(A, 128)          # 128-lane aligned head halves
    NH = 2 * Apad

    wh = jnp.zeros((H, NH), matmul_dtype)
    wh = wh.at[:, :A].set(raw["wm"].astype(matmul_dtype))
    wh = wh.at[:, Apad:Apad + A].set(raw["ws"].astype(matmul_dtype))
    bh = jnp.zeros((1, NH), jnp.float32)
    bh = bh.at[:, :A].set(raw["bm"]).at[:, Apad:Apad + A].set(raw["bs"])

    return dict(
        w1=raw["w1"].astype(matmul_dtype), b1=raw["b1"].astype(jnp.float32),
        w2=raw["w2"].astype(matmul_dtype), b2=raw["b2"].astype(jnp.float32),
        wh=wh, bh=bh,
        A=int(A), Apad=int(Apad),
    )


def _pick_tb(B):
    if B >= 1024:
        return 512                                   # amortize per-step overhead
    if B >= 16:
        return _round_up(_round_up(B, 8) // 2, 8)    # >=2 grid steps (2 TCs on v7x)
    return max(_round_up(B, 8), 8)                   # tiny batch: minimal padding


def actor_forward(x, p, *, tb=None):
    """x: (B, D) f32. p: output of prepare_params. Returns (mean, log_std), (B, A)."""
    B, D = x.shape
    H = p["w1"].shape[1]
    A, Apad = p["A"], p["Apad"]
    NH = 2 * Apad

    if tb is None:
        tb = _pick_tb(B)
    Bp = _round_up(B, tb)
    xp = x if Bp == B else jnp.pad(x, ((0, Bp - B), (0, 0)))

    grid = (Bp // tb,)

    # Grid-invariant (weight/bias) blocks stay resident across the batch grid.
    # For very large hidden sizes on v7x (64 MiB VMEM) don't double-buffer them.
    single_buffer = H >= 2048

    def invariant(a):
        nd = a.ndim
        if single_buffer:
            return pl.BlockSpec(a.shape, lambda i: (0,) * nd,
                                pipeline_mode=pl.Buffered(1))
        return pl.BlockSpec(a.shape, lambda i: (0,) * nd)

    wbytes = jnp.dtype(p["w1"].dtype).itemsize
    flops = 2 * Bp * (D * H + H * H + H * NH)
    bytes_accessed = (4 * Bp * D
                      + wbytes * (D * H + H * H + H * NH)
                      + 4 * (H + H + NH)
                      + 4 * Bp * NH)

    out = pl.pallas_call(
        actor_kernel,
        out_shape=jax.ShapeDtypeStruct((Bp, NH), jnp.float32),
        grid=grid,
        in_specs=[
            pl.BlockSpec((tb, D), lambda i: (i, 0)),   # x: tiled over batch
            invariant(p["w1"]), invariant(p["b1"]),
            invariant(p["w2"]), invariant(p["b2"]),
            invariant(p["wh"]), invariant(p["bh"]),
        ],
        out_specs=pl.BlockSpec((tb, NH), lambda i: (i, 0)),
        compiler_params=pltpu.CompilerParams(
            dimension_semantics=("parallel",),
            vmem_limit_bytes=32 * 1024 * 1024),
        cost_estimate=pl.CostEstimate(
            flops=flops, transcendentals=Bp * Apad, bytes_accessed=bytes_accessed),
    )(xp, p["w1"], p["b1"], p["w2"], p["b2"], p["wh"], p["bh"])

    mean = out[:B, :A]
    log_std = out[:B, Apad:Apad + A]   # Apad is a multiple of 128 -> aligned slice
    return mean, log_std


def init_params(key, input_dim, hidden_dim, action_dim):
    """Deterministic synthetic init (uniform, like torch Linear default scale)."""
    ks = jax.random.split(key, 8)

    def lin(kw, kb, fan_in, fan_out):
        bound = 1.0 / jnp.sqrt(jnp.float32(fan_in))
        w = jax.random.uniform(kw, (fan_in, fan_out), jnp.float32, -bound, bound)
        b = jax.random.uniform(kb, (1, fan_out), jnp.float32, -bound, bound)
        return w, b

    w1, b1 = lin(ks[0], ks[1], input_dim, hidden_dim)
    w2, b2 = lin(ks[2], ks[3], hidden_dim, hidden_dim)
    wm, bm = lin(ks[4], ks[5], hidden_dim, action_dim)
    ws, bs = lin(ks[6], ks[7], hidden_dim, action_dim)
    return dict(w1=w1, b1=b1, w2=w2, b2=b2, wm=wm, bm=bm, ws=ws, bs=bs)


def actor_forward_ref(x, p):
    h = jnp.maximum(x @ p["w1"] + p["b1"], 0.0)
    h = jnp.maximum(h @ p["w2"] + p["b2"], 0.0)
    mean = h @ p["wm"] + p["bm"]
    log_std = jnp.tanh(h @ p["ws"] + p["bs"])
    log_std = LOG_STD_MIN + 0.5 * (LOG_STD_MAX - LOG_STD_MIN) * (log_std + 1.0)
    return mean, log_std


if __name__ == "__main__":
    B, D, H, A = 2, 16, 32, 8

    key = jax.random.PRNGKey(0)
    k_x, k_p = jax.random.split(key)
    x = jax.random.normal(k_x, (B, D), dtype=jnp.float32)
    raw = init_params(k_p, D, H, A)
    mean_ref, log_std_ref = actor_forward_ref(x, raw)

    # f32 MXU path: matches the f32 reference tightly.
    p32 = prepare_params(raw, matmul_dtype=jnp.float32)
    mean, log_std = actor_forward(x, p32)
    jax.block_until_ready((mean, log_std))
    assert mean.shape == (B, A) and log_std.shape == (B, A)
    assert jnp.allclose(mean, mean_ref, atol=1e-5, rtol=1e-5)
    assert jnp.allclose(log_std, log_std_ref, atol=1e-5, rtol=1e-5)
    assert float(log_std.min()) >= LOG_STD_MIN and float(log_std.max()) <= LOG_STD_MAX

    # bf16 MXU path (production config on v5e/v6e/v7x): looser tolerance.
    pbf = prepare_params(raw, matmul_dtype=jnp.bfloat16)
    mean_b, log_std_b = actor_forward(x, pbf)
    jax.block_until_ready((mean_b, log_std_b))
    assert jnp.allclose(mean_b, mean_ref, atol=3e-2, rtol=3e-2)
    assert jnp.allclose(log_std_b, log_std_ref, atol=3e-2, rtol=3e-2)
    assert float(log_std_b.min()) >= LOG_STD_MIN and float(log_std_b.max()) <= LOG_STD_MAX

    print("KERNEL_OK")
</pallas_src>

<mosaic_0001>
module attributes {stable_mosaic.version = 11 : i64} {
  func.func @actor_kernel(%arg0: i32, %arg1: memref<8x16xf32, #tpu.memory_space<vmem>>, %arg2: memref<16x32xf32, #tpu.memory_space<vmem>>, %arg3: memref<1x32xf32, #tpu.memory_space<vmem>>, %arg4: memref<32x32xf32, #tpu.memory_space<vmem>>, %arg5: memref<1x32xf32, #tpu.memory_space<vmem>>, %arg6: memref<32x256xf32, #tpu.memory_space<vmem>>, %arg7: memref<1x256xf32, #tpu.memory_space<vmem>>, %arg8: memref<8x256xf32, #tpu.memory_space<vmem>>) attributes {dimension_semantics = [#tpu.dimension_semantics<parallel>], iteration_bounds = array<i64: 1>, scalar_prefetch = 0 : i64, scratch_operands = 0 : i64, tpu.core_type = #tpu.core_type<tc>, window_params = [{transform_indices = @transform_0, window_bounds = array<i64: 8, 16>}, {pipeline_mode = #tpu.pipeline_mode<synchronous>, transform_indices = @transform_1, window_bounds = array<i64: 16, 32>}, {pipeline_mode = #tpu.pipeline_mode<synchronous>, transform_indices = @transform_2, window_bounds = array<i64: 1, 32>}, {pipeline_mode = #tpu.pipeline_mode<synchronous>, transform_indices = @transform_3, window_bounds = array<i64: 32, 32>}, {pipeline_mode = #tpu.pipeline_mode<synchronous>, transform_indices = @transform_4, window_bounds = array<i64: 1, 32>}, {pipeline_mode = #tpu.pipeline_mode<synchronous>, transform_indices = @transform_5, window_bounds = array<i64: 32, 256>}, {pipeline_mode = #tpu.pipeline_mode<synchronous>, transform_indices = @transform_6, window_bounds = array<i64: 1, 256>}, {transform_indices = @transform_7, window_bounds = array<i64: 8, 256>}]} {
    %c0 = arith.constant 0 : index
    %c0_0 = arith.constant 0 : index
    %0 = vector.load %arg1[%c0, %c0_0] : memref<8x16xf32, #tpu.memory_space<vmem>>, vector<8x16xf32>
    %c0_1 = arith.constant 0 : index
    %c0_2 = arith.constant 0 : index
    %1 = vector.load %arg2[%c0_1, %c0_2] : memref<16x32xf32, #tpu.memory_space<vmem>>, vector<16x32xf32>
    %cst = arith.constant dense<0.000000e+00> : vector<8x32xf32>
    %2 = tpu.matmul %0, %1, %cst {dimension_numbers = #tpu.dot_dimension_numbers<[1], [0], [0], [1], [0, 0, 1, 1], [], []>} : vector<8x16xf32>, vector<16x32xf32>, vector<8x32xf32> -> vector<8x32xf32>
    %c0_3 = arith.constant 0 : index
    %c0_4 = arith.constant 0 : index
    %3 = vector.load %arg3[%c0_3, %c0_4] : memref<1x32xf32, #tpu.memory_space<vmem>>, vector<1x32xf32>
    %4 = vector.broadcast %3 : vector<1x32xf32> to vector<8x32xf32>
    %5 = arith.addf %2, %4 : vector<8x32xf32>
    %cst_5 = arith.constant 0.000000e+00 : f32
    %6 = vector.broadcast %cst_5 : f32 to vector<8x32xf32>
    %7 = arith.maximumf %5, %6 : vector<8x32xf32>
    %c0_6 = arith.constant 0 : index
    %c0_7 = arith.constant 0 : index
    %8 = vector.load %arg4[%c0_6, %c0_7] : memref<32x32xf32, #tpu.memory_space<vmem>>, vector<32x32xf32>
    %cst_8 = arith.constant dense<0.000000e+00> : vector<8x32xf32>
    %9 = tpu.matmul %7, %8, %cst_8 {dimension_numbers = #tpu.dot_dimension_numbers<[1], [0], [0], [1], [0, 0, 1, 1], [], []>} : vector<8x32xf32>, vector<32x32xf32>, vector<8x32xf32> -> vector<8x32xf32>
    %c0_9 = arith.constant 0 : index
    %c0_10 = arith.constant 0 : index
    %10 = vector.load %arg5[%c0_9, %c0_10] : memref<1x32xf32, #tpu.memory_space<vmem>>, vector<1x32xf32>
    %11 = vector.broadcast %10 : vector<1x32xf32> to vector<8x32xf32>
    %12 = arith.addf %9, %11 : vector<8x32xf32>
    %cst_11 = arith.constant 0.000000e+00 : f32
    %13 = vector.broadcast %cst_11 : f32 to vector<8x32xf32>
    %14 = arith.maximumf %12, %13 : vector<8x32xf32>
    %c0_12 = arith.constant 0 : index
    %c0_13 = arith.constant 0 : index
    %15 = vector.load %arg6[%c0_12, %c0_13] : memref<32x256xf32, #tpu.memory_space<vmem>>, vector<32x256xf32>
    %cst_14 = arith.constant dense<0.000000e+00> : vector<8x256xf32>
    %16 = tpu.matmul %14, %15, %cst_14 {dimension_numbers = #tpu.dot_dimension_numbers<[1], [0], [0], [1], [0, 0, 1, 1], [], []>} : vector<8x32xf32>, vector<32x256xf32>, vector<8x256xf32> -> vector<8x256xf32>
    %c0_15 = arith.constant 0 : index
    %c0_16 = arith.constant 0 : index
    %17 = vector.load %arg7[%c0_15, %c0_16] : memref<1x256xf32, #tpu.memory_space<vmem>>, vector<1x256xf32>
    %18 = vector.broadcast %17 : vector<1x256xf32> to vector<8x256xf32>
    %19 = arith.addf %16, %18 : vector<8x256xf32>
    %20 = vector.extract_strided_slice %19 {offsets = [0, 0], sizes = [8, 128], strides = [1, 1]} : vector<8x256xf32> to vector<8x128xf32>
    %c0_17 = arith.constant 0 : index
    %c0_18 = arith.constant 0 : index
    %21 = vector.load %arg8[%c0_17, %c0_18] : memref<8x256xf32, #tpu.memory_space<vmem>>, vector<8x128xf32>
    tpu.vector_store %arg8[%c0_17, %c0_18], %20 {strides = array<i32>} : memref<8x256xf32, #tpu.memory_space<vmem>>, vector<8x128xf32>,
    %22 = vector.extract_strided_slice %19 {offsets = [0, 128], sizes = [8, 128], strides = [1, 1]} : vector<8x256xf32> to vector<8x128xf32>
    %23 = math.tanh %22 : vector<8x128xf32>
    %cst_19 = arith.constant 1.000000e+00 : f32
    %24 = vector.broadcast %cst_19 : f32 to vector<8x128xf32>
    %25 = arith.addf %23, %24 : vector<8x128xf32>
    %cst_20 = arith.constant 3.500000e+00 : f32
    %26 = vector.broadcast %cst_20 : f32 to vector<8x128xf32>
    %27 = arith.mulf %26, %25 : vector<8x128xf32>
    %cst_21 = arith.constant -5.000000e+00 : f32
    %28 = vector.broadcast %cst_21 : f32 to vector<8x128xf32>
    %29 = arith.addf %28, %27 : vector<8x128xf32>
    %c0_22 = arith.constant 0 : index
    %c128 = arith.constant 128 : index
    %30 = vector.load %arg8[%c0_22, %c128] : memref<8x256xf32, #tpu.memory_space<vmem>>, vector<8x128xf32>
    tpu.vector_store %arg8[%c0_22, %c128], %29 {strides = array<i32>} : memref<8x256xf32, #tpu.memory_space<vmem>>, vector<8x128xf32>,
    return
  }
  func.func @transform_0(%arg0: i32) -> (i32, i32) {
    %c0_i32 = arith.constant 0 : i32
    %c0_i32_0 = arith.constant 0 : i32
    return %arg0, %c0_i32 : i32, i32
  }
  func.func @transform_1(%arg0: i32) -> (i32, i32) {
    %c0_i32 = arith.constant 0 : i32
    %c0_i32_0 = arith.constant 0 : i32
    %c0_i32_1 = arith.constant 0 : i32
    return %c0_i32, %c0_i32_0 : i32, i32
  }
  func.func @transform_2(%arg0: i32) -> (i32, i32) {
    %c0_i32 = arith.constant 0 : i32
    %c0_i32_0 = arith.constant 0 : i32
    %c0_i32_1 = arith.constant 0 : i32
    return %c0_i32, %c0_i32_0 : i32, i32
  }
  func.func @transform_3(%arg0: i32) -> (i32, i32) {
    %c0_i32 = arith.constant 0 : i32
    %c0_i32_0 = arith.constant 0 : i32
    %c0_i32_1 = arith.constant 0 : i32
    return %c0_i32, %c0_i32_0 : i32, i32
  }
  func.func @transform_4(%arg0: i32) -> (i32, i32) {
    %c0_i32 = arith.constant 0 : i32
    %c0_i32_0 = arith.constant 0 : i32
    %c0_i32_1 = arith.constant 0 : i32
    return %c0_i32, %c0_i32_0 : i32, i32
  }
  func.func @transform_5(%arg0: i32) -> (i32, i32) {
    %c0_i32 = arith.constant 0 : i32
    %c0_i32_0 = arith.constant 0 : i32
    %c0_i32_1 = arith.constant 0 : i32
    return %c0_i32, %c0_i32_0 : i32, i32
  }
  func.func @transform_6(%arg0: i32) -> (i32, i32) {
    %c0_i32 = arith.constant 0 : i32
    %c0_i32_0 = arith.constant 0 : i32
    %c0_i32_1 = arith.constant 0 : i32
    return %c0_i32, %c0_i32_0 : i32, i32
  }
  func.func @transform_7(%arg0: i32) -> (i32, i32) {
    %c0_i32 = arith.constant 0 : i32
    %c0_i32_0 = arith.constant 0 : i32
    return %arg0, %c0_i32 : i32, i32
  }
}

</mosaic_0001>

<bundles_post_ra>
// kernel: tpu_custom_call.1
= control target key start
LH: loop header
LB: loop body
LE: loop exit
PB: predicated region body
PF: predicated region fallthrough
CT: control target
= control target key end

     0   :  { %12 = vsyncpa [#allocation3], 0  ;;  %s677_s0 = inlined_call_operand.hbm [shape: f32[8,16], index: 0, kind: input, shape index: {}]   ;;  %s678_s1 = inlined_call_operand.hbm [shape: f32[16,32], index: 1, kind: input, shape index: {}]   ;;  %s679_s2 = inlined_call_operand.vmem [shape: f32[1,32], index: 2, kind: input, shape index: {}]   ;;  %s680_s3 = inlined_call_operand.hbm [shape: f32[32,32], index: 3, kind: input, shape index: {}]   ;;  %s681_s4 = inlined_call_operand.vmem [shape: f32[1,32], index: 4, kind: input, shape index: {}]   ;;  %s682_s5 = inlined_call_operand.hbm [shape: f32[32,256], index: 5, kind: input, shape index: {}]   ;;  %s683_s6 = inlined_call_operand.vmem [shape: f32[1,256], index: 6, kind: input, shape index: {}]   ;;  %s684_s7 = inlined_call_operand.hbm [shape: f32[8,256], index: 7, kind: output, shape index: {}]  }
   0x1   :  { %13 = vsyncpa [#allocation6], 0 }
   0x2   :  { %14 = vsyncpa [#allocation9], 0 }
   0x3   :  { %15 = vsyncpa [#allocation4], 0  ;;  %s548_s24 = smov [#allocation5]   ;;  %s430_s28 = scalar_lea.hbm %s678_s1, 256 }
   0x4   :  { %s31_s25 = sshll.u32 %s548_s24, 4  ;;  %p431_p0 = scmp.ne.s32.totalorder %s678_s1, %s430_s28  ;;  %s32_s25 = int_to_ptr.vmem [resolvable:$true] %s31_s25 }
   0x5   :  { %p434_p1 = scmp.lt.u32.totalorder %s430_s28, %s678_s1 }
   0x7   :  { %p436_p2 = pnand %p434_p1, %p431_p0 }
   0x9   :  { %439 = shalt.err (!%p436_p2)
}
   0xa   :  { %s440_s10 = scalar_lea.vmem %s32_s25, 256  ;;  %p445_p4 = scmp.lt.s32.totalorder %s32_s25, %s32_s25 }
   0xb   :  { %p441_p3 = scmp.ne.s32.totalorder %s32_s25, %s440_s10  ;;  %p446_p5 = scmp.lt.s32.totalorder %s440_s10, %s440_s10 }
   0xd   :  { %p447_p6 = por %p446_p5, %p445_p4 }
   0xf   :  { %p448_p7 = pnand %p447_p6, %p441_p3 }
  0x11   :  { %451 = shalt.err (!%p448_p7)
}
  0x12   :  { %s549_s11 = smov 128   ;;  %s550_s12 = smov 8  }
  0x13   :  { %37 = dma.hbm_to_vmem [thread:$0]  %s678_s1, 256, %s32_s25, [#allocation6], %s549_s11, %s549_s11, %s550_s12  }
  0x14   :  { %s551_s15 = smov [#allocation2]   ;;  %s552_s17 = smov [#allocation7]  }
  0x15   :  { %s22_s16 = sshll.u32 %s551_s15, 4  ;;  %s45_s18 = sshll.u32 %s552_s17, 4  ;;  %s23_s16 = int_to_ptr.vmem [resolvable:$true] %s22_s16  ;;  %s46_s18 = int_to_ptr.vmem [resolvable:$true] %s45_s18 }
  0x16   :  { %s452_s21 = scalar_lea.hbm %s677_s0, 128 }
  0x17   :  { %p453_p8 = scmp.ne.s32.totalorder %s677_s0, %s452_s21  ;;  %p456_p9 = scmp.lt.u32.totalorder %s452_s21, %s677_s0 }
  0x19   :  { %p458_p10 = pnand %p456_p9, %p453_p8 }
  0x1b   :  { %461 = shalt.err (!%p458_p10)
}
  0x1c   :  { %s462_s1 = scalar_lea.vmem %s23_s16, 128  ;;  %p467_p12 = scmp.lt.s32.totalorder %s23_s16, %s23_s16 }
  0x1d   :  { %p463_p11 = scmp.ne.s32.totalorder %s23_s16, %s462_s1  ;;  %p468_p13 = scmp.lt.s32.totalorder %s462_s1, %s462_s1 }
  0x1f   :  { %p469_p0 = por %p468_p13, %p467_p12 }
  0x21   :  { %p470_p1 = pnand %p469_p0, %p463_p11 }
  0x23   :  { %473 = shalt.err (!%p470_p1)
}
  0x24   :  { %25 = dma.hbm_to_vmem [thread:$0]  %s677_s0, 128, %s23_s16, [#allocation3]  }
  0x25   :  { %s474_s30 = scalar_lea.hbm %s680_s3, 512 }
  0x26   :  { %p475_p2 = scmp.ne.s32.totalorder %s680_s3, %s474_s30  ;;  %p478_p3 = scmp.lt.u32.totalorder %s474_s30, %s680_s3 }
  0x28   :  { %p480_p4 = pnand %p478_p3, %p475_p2 }
  0x2a   :  { %483 = shalt.err (!%p480_p4)
}
  0x2b   :  { %s484_s14 = scalar_lea.vmem %s46_s18, 512  ;;  %p489_p6 = scmp.lt.s32.totalorder %s46_s18, %s46_s18 }
  0x2c   :  { %p485_p5 = scmp.ne.s32.totalorder %s46_s18, %s484_s14  ;;  %p490_p7 = scmp.lt.s32.totalorder %s484_s14, %s484_s14 }
  0x2e   :  { %p491_p8 = por %p490_p7, %p489_p6 }
  0x30   :  { %p492_p9 = pnand %p491_p8, %p485_p5 }
  0x32   :  { %495 = shalt.err (!%p492_p9)
}
  0x33   :  { %51 = dma.hbm_to_vmem [thread:$0]  %s680_s3, 512, %s46_s18, [#allocation6], %s549_s11, %s549_s11, %s550_s12  }
  0x34   :  { %s553_s16 = smov [#allocation8]   ;;  %s496_s21 = scalar_lea.hbm %s682_s5, 1024 }
  0x35   :  { %s59_s17 = sshll.u32 %s553_s16, 4  ;;  %p497_p10 = scmp.ne.s32.totalorder %s682_s5, %s496_s21  ;;  %s60_s17 = int_to_ptr.vmem [resolvable:$true] %s59_s17 }
  0x36   :  { %p500_p11 = scmp.lt.u32.totalorder %s496_s21, %s682_s5 }
  0x38   :  { %p502_p12 = pnand %p500_p11, %p497_p10 }
  0x3a   :  { %505 = shalt.err (!%p502_p12)
}
  0x3b   :  { %s506_s1 = scalar_lea.vmem %s60_s17, 1024  ;;  %p511_p0 = scmp.lt.s32.totalorder %s60_s17, %s60_s17 }
  0x3c   :  { %p507_p13 = scmp.ne.s32.totalorder %s60_s17, %s506_s1  ;;  %p512_p1 = scmp.lt.s32.totalorder %s506_s1, %s506_s1 }
  0x3e   :  { %p513_p2 = por %p512_p1, %p511_p0 }
  0x40   :  { %p514_p3 = pnand %p513_p2, %p507_p13 }
  0x42   :  { %517 = shalt.err (!%p514_p3)
}
  0x43   :  { %s554_s3 = smov 256   ;;  %s555_s11 = smov 16  }
  0x44   :  { %65 = dma.hbm_to_vmem [thread:$0]  %s682_s5, 1024, %s60_s17, [#allocation9], %s554_s3, %s554_s3, %s555_s11  }
  0x45   :  { %540 = dma.done.wait [#allocation3], 128  }
  0x46   :  { %541 = vsyncadd [#allocation3], 4294967168 }
  0x47   :  { %542 = dma.done.wait [#allocation6], 768  }
  0x48   :  { %543 = vsyncadd [#allocation6], 4294966528 }
  0x49   :  { %544 = dma.done.wait [#allocation9], 1024  }
  0x4a   :  { %545 = vsyncadd [#allocation9], 4294966272  ;;  %v556_v0 = vmov 0.0|0.0   ;;  %vm557_vm0 = vmmov 0   ;;  %v558_v1 = vmov 0.0   ;;  %v81_v2 = vld [vmem:[#allocation5] sm:$0xff]  ;;  %v261_v34 = vlaneseq }
  0x4b   :  { %399 = vmatprep.subr.bf16.mxu0 %v556_v0  ;;  %385 = vmatprep.mubr.msk.f32.mxu0 %vm557_vm0, %v558_v1  ;;  %v82_v3 = vld [vmem:[#allocation5 + $0x8] sm:$0xff]  ;;  %v165_v5 = vld [vmem:[#allocation7] sm:$0xff]  ;;  %v166_v6 = vld [vmem:[#allocation7 + $0x8] sm:$0xff]  ;;  %vm90_vm1 = vcmask 130048   ;;  %vm176_vm2 = vcmask 261120  }
  0x4c   :  { %402 = vmatprep.subr.bf16.mxu1 %v556_v0  ;;  %396 = vmatprep.mubr.msk.f32.mxu1 %vm557_vm0, %v558_v1  ;;  %v400_v4 = vpack.c.bf16 %v82_v3, %v81_v2  ;;  %v403_v7 = vpack.c.bf16 %v166_v6, %v165_v5  ;;  %v80_v8 = vld [vmem:[#allocation2] sm:$0xff]  ;;  %v167_v9 = vld [vmem:[#allocation7 + $0x10] sm:$0xff]  ;;  %v168_v10 = vld [vmem:[#allocation7 + $0x18] sm:$0xff]  ;;  %v262_v35 = vshrl.u32 %v261_v34, 7 }
  0x4d   :  { %v406_v11 = vpack.c.bf16 %v168_v10, %v167_v9  ;;  %v252_v12 = vld [vmem:[#allocation8 + $0x8] sm:$0xff]  ;;  %v254_v13 = vld [vmem:[#allocation8 + $0x18] sm:$0xff]  ;;  %v251_v14 = vld [vmem:[#allocation8] sm:$0xff] }
  0x4e   :  { %401 = vmatpush3.bf16.msra.mxu0 %v400_v4  ;;  %404 = vmatpush3.bf16.msra.mxu1 %v403_v7  ;;  %v408_v15 = vpack.c.bf16 %v254_v13, %v252_v12  ;;  %v253_v16 = vld [vmem:[#allocation8 + $0x10] sm:$0xff]  ;;  %v368_v18 = vld [vmem:[%s679_s2] ss:$0 sm:$0xff]  ;;  %v258_v24 = vld [vmem:[#allocation8 + $0x38] sm:$0xff]  ;;  %v263_v36 = vsub.s32 0, %v262_v35  ;;  %v267_v38 = vsub.s32 1, %v262_v35 }
  0x4f   :  { %405 = vmatprep.subr.bf16.mxu1 %v556_v0  ;;  %v410_v17 = vpack.c.bf16 %v253_v16, %v251_v14  ;;  %v256_v23 = vld [vmem:[#allocation8 + $0x28] sm:$0xff]  ;;  %v255_v26 = vld [vmem:[#allocation8 + $0x20] sm:$0xff]  ;;  %v257_v27 = vld [vmem:[#allocation8 + $0x30] sm:$0xff] }
  0x50   :  { %409 = vmatprep.subr.bf16.mxu0 %v408_v15  ;;  %v412_v25 = vpack.c.bf16 %v258_v24, %v256_v23  ;;  %v414_v28 = vpack.c.bf16 %v257_v27, %v255_v26  ;;  %v370_v29 = vld [vmem:[%s681_s4] ss:$0 sm:$0xff]  ;;  %s559_s4 = smov [#allocation10]  }
  0x51   :  { %386 = vmatmul.mubr.msk.f32.vlgmr.msra.gmra.mrb[0].mxu0 %vm90_vm1, %v80_v8  ;;  %v259_v37 = vld [vmem:[%s683_s6] sm:$0x3]  ;;  %s357_s30 = sshll.u32 %s559_s4, 4  ;;  %s358_s30 = int_to_ptr.vmem [resolvable:$true] %s357_s30 }
  0x52   :  { %338 = vmatprep.mubr.f32.mxu0 %v558_v1  ;;  %407 = vmatpush3.bf16.msra.mxu1 %v406_v11  ;;  %v264_v39 = vrot.slane %v259_v37, %v263_v36  ;;  %v268_v40 = vrot.slane %v259_v37, %v267_v38  ;;  %s518_s8 = scalar_lea.vmem %s358_s30, 256  ;;  %p523_p5 = scmp.lt.s32.totalorder %s358_s30, %s358_s30 }
  0x53   :  { %411 = vmatpush1.bf16.msra.mxu0 %v410_v17  ;;  %p519_p4 = scmp.ne.s32.totalorder %s358_s30, %s518_s8  ;;  %p524_p6 = scmp.lt.s32.totalorder %s518_s8, %s518_s8 }
  0x54   :  { %413 = vmatprep.subr.bf16.mxu0 %v412_v25 }
  0x55   :  { %p525_p7 = por %p524_p6, %p523_p5 }
  0x57   :  { %415 = vmatpush1.bf16.msra.mxu0 %v414_v28  ;;  %p526_p8 = pnand %p525_p7, %p519_p4 }
 0x124   :  { %v160_v19 = vpop.f32.mrb[0].mxu0 }
 0x125   :  { %v161_v20 = vadd.f32 %v368_v18, %v160_v19  ;;  %v387_v21 = vpop.f32.mrb[1].mxu0 }
 0x127   :  { %v164_v22 = vmax.f32 %v161_v20, 0.0 }
 0x129   :  { %397 = vmatmul.mubr.msk.f32.vlgmr.msra.gmra.mrb[0].mxu1 %vm176_vm2, %v164_v22 }
 0x1fc   :  { %v246_v30 = vpop.f32.mrb[0].mxu1 }
 0x1fd   :  { %v247_v31 = vadd.f32 %v370_v29, %v246_v30  ;;  %v398_v32 = vpop.f32.mrb[1].mxu1 }
 0x1ff   :  { %v250_v33 = vmax.f32 %v247_v31, 0.0 }
 0x201   :  { %372 = vmatmul.mubr.msk.f32.vlgmr.msra.gmra.mrb[2].mxu0 %vm176_vm2, %v250_v33 }
 0x2d4   :  { %v340_v41 = vpop.f32.mrb[2].mxu0 }
 0x2d5   :  { %v341_v42 = vadd.f32 %v340_v41, %v264_v39  ;;  %v342_v43 = vpop.f32.mrb[3].mxu0 }
 0x2d6   :  { %v343_v44 = vadd.f32 %v342_v43, %v268_v40 }
 0x2d7   :  { %345 = vst [vmem:[#allocation10] sm:$0xff] %v341_v42 }
 0x2d8   :  { %428 = vtanh.f32 %v343_v44 }
 0x2e2   :  { %v429_v45 = vpop.eup %428 }
 0x2e3   :  { %v347_v46 = vadd.f32 1.0, %v429_v45 }
 0x2e5   :  { %v348_v47 = vmul.f32 3.5, %v347_v46 }
 0x2e7   :  { %v349_v48 = vadd.f32 -5.0, %v348_v47 }
 0x2e9   :  { %350 = vst [vmem:[#allocation10 + $0x8] sm:$0xff] %v349_v48 }
 0x2ea   :  { %529 = shalt.err (!%p526_p8)
}
 0x2eb   :  { %s530_s10 = scalar_lea.hbm %s684_s7, 256 }
 0x2ec   :  { %p531_p9 = scmp.ne.s32.totalorder %s684_s7, %s530_s10  ;;  %p534_p10 = scmp.lt.u32.totalorder %s530_s10, %s684_s7 }
 0x2ee   :  { %p536_p11 = pnand %p534_p10, %p531_p9 }
 0x2f0   :  { %539 = shalt.err (!%p536_p11)
}
 0x2f1   :  { %360 = dma.vmem_to_hbm [thread:$0]  %s358_s30, 256, %s684_s7, [#allocation4]  }
 0x2f2   :  { %546 = dma.done.wait [#allocation4], 256  }
 0x2f3   :  { %547 = vsyncadd [#allocation4], 4294967040 }
 0x2f4   :  { %364 = vsyncpa [#allocation3], 1 }
 0x2f5   :  { %365 = vsyncpa [#allocation6], 1 }
 0x2f6   :  { %366 = vsyncpa [#allocation9], 1 }
 0x2f7   :  { %367 = vsyncpa [#allocation4], 1 }

</bundles_post_ra>
